<compile_context>
chip_gen: v7x
topology: tpu7x:2x2x1
jax: 0.10.0
libtpu: 0.0.40
codegen_flags: <defaults>
</compile_context>

<pallas_src>
import jax
import jax.numpy as jnp
from jax.experimental import pallas as pl
from jax.experimental.pallas import tpu as pltpu


def _dual_attention_kernel(slab_ref, b_ref, o_ref):
    """slab_ref: (B+1, HW, C) VMEM -- pages 0..B-1 are activations, page B holds
    the PAM / CAM 1x1-conv weight rows (rows 0 and 1).
    b_ref: (2,) SMEM -- [pam_bias, cam_bias].  o_ref: (B, HW, C) VMEM."""
    B, HW, C = o_ref.shape

    # Native-dtype load, f32 math in-kernel.
    x = slab_ref[0:B, :, :].astype(jnp.float32)       # (B, HW, C)
    wp = slab_ref[B, 0:1, :].astype(jnp.float32)      # (1, C) PAM conv weights
    wc = slab_ref[B, 1:2, :].astype(jnp.float32)      # (1, C) CAM conv weights

    # Both 1x1 convs fused: one lane-reduce over the stacked products.
    prod = jnp.concatenate([x * wp, x * wc], axis=0)   # (2B, HW, C)
    s = jnp.sum(prod, axis=-1, keepdims=True)          # (2B, HW, 1) conv scores

    # Vectorized per-batch pooling (biases commute with max/mean, so they are
    # added to the pooled scalars read straight from SMEM).
    pw = jax.nn.sigmoid(jnp.max(s[0:B], axis=1, keepdims=True) + b_ref[0])       # (B,1,1)
    cw = jax.nn.sigmoid(jnp.mean(s[B:2 * B], axis=1, keepdims=True) + b_ref[1])  # (B,1,1)

    # Per-batch gate broadcast over the whole (HW, C) tile; one full store.
    o_ref[...] = (x * (pw * cw)).astype(o_ref.dtype)


def dual_attention_nhwc(x_bhwc, w_pam, b_pam, w_cam, b_cam):
    """NHWC-native entry point (no layout ops beyond free reshapes)."""
    B, H, W, C = x_bhwc.shape
    assert C == 128, "module defines 1x1 convs with in_channels=128"
    # MaxPool2d(2,2) must produce a 1x1 map for the module's broadcast to be valid.
    assert H == 2 and W == 2, "DualAttentionModule broadcast requires H == W == 2"
    HW = H * W
    itemsize = jnp.dtype(x_bhwc.dtype).itemsize

    # Fold the two conv-weight rows into one extra page of the activation slab
    # (single VMEM input DMA); biases go to SMEM as scalars.
    w_rows = jnp.concatenate(
        [w_pam[None, :], w_cam[None, :], jnp.zeros((HW - 2, C), jnp.float32)],
        axis=0,
    ).astype(x_bhwc.dtype)                                     # (HW, C)
    slab = jnp.concatenate([x_bhwc.reshape(B, HW, C), w_rows[None]], axis=0)  # (B+1, HW, C)
    biases = jnp.concatenate([b_pam, b_cam]).astype(jnp.float32)              # (2,)

    out = pl.pallas_call(
        _dual_attention_kernel,
        out_shape=jax.ShapeDtypeStruct((B, HW, C), x_bhwc.dtype),
        in_specs=[
            pl.BlockSpec(memory_space=pltpu.MemorySpace.VMEM),  # slab (acts + weights)
            pl.BlockSpec(memory_space=pltpu.MemorySpace.SMEM),  # scalar biases
        ],
        out_specs=pl.BlockSpec(memory_space=pltpu.MemorySpace.VMEM),
        compiler_params=pltpu.CompilerParams(
            # Let XLA fuse the slab's producer (relayout/concat) into the call.
            allow_input_fusion=[True, False],
        ),
        cost_estimate=pl.CostEstimate(
            flops=6 * B * HW * C,
            transcendentals=2 * B,
            bytes_accessed=(2 * B + 1) * HW * C * itemsize + 2 * 4,
        ),
    )(slab, biases)

    return out.reshape(B, H, W, C)


def dual_attention(x_nchw, w_pam, b_pam, w_cam, b_cam):
    """NCHW (PyTorch-layout) convenience wrapper.
    TODO(synk): if the upstream producer can emit NHWC, call dual_attention_nhwc
    directly and drop both transposes; under jit, allow_input_fusion lets XLA
    fold this relayout into the kernel's input handling."""
    out_bhwc = dual_attention_nhwc(
        jnp.transpose(x_nchw, (0, 2, 3, 1)), w_pam, b_pam, w_cam, b_cam)
    return jnp.transpose(out_bhwc, (0, 3, 1, 2))


def ref_forward(x, wp, bp, wc, bc):
    """Pure-JAX reference mirroring the PyTorch forward exactly (NCHW)."""
    B, C, H, W = x.shape
    # PixelAttentionModule: 1x1 conv -> MaxPool2d(2,2) -> sigmoid
    am_p = jnp.einsum("bchw,c->bhw", x, wp) + bp[0]
    am_p = am_p.reshape(B, H // 2, 2, W // 2, 2).max(axis=(2, 4))
    pixel_w = jax.nn.sigmoid(am_p)[:, None]                              # (B,1,1,1)
    # ChannelAttentionModule: 1x1 conv -> AdaptiveAvgPool2d((1,1)) -> sigmoid
    am_c = jnp.mean(jnp.einsum("bchw,c->bhw", x, wc) + bc[0], axis=(1, 2))
    chan_w = jax.nn.sigmoid(am_c)[:, None, None, None]                   # (B,1,1,1)
    return x * pixel_w * chan_w


if __name__ == "__main__":
    key = jax.random.PRNGKey(0)
    kx, kwp, kbp, kwc, kbc = jax.random.split(key, 5)

    B, C, H, W = 2, 128, 2, 2   # module hard-codes C=128; H=W=2 for valid broadcast
    x = jax.random.normal(kx, (B, C, H, W), dtype=jnp.float32)

    # Conv2d(128, 1, kernel_size=1) params: weight (1,128,1,1) -> (128,), bias (1,)
    w_pam = jax.random.normal(kwp, (C,), dtype=jnp.float32) * 0.05
    b_pam = jax.random.normal(kbp, (1,), dtype=jnp.float32) * 0.05
    w_cam = jax.random.normal(kwc, (C,), dtype=jnp.float32) * 0.05
    b_cam = jax.random.normal(kbc, (1,), dtype=jnp.float32) * 0.05

    out = jax.jit(dual_attention)(x, w_pam, b_pam, w_cam, b_cam)
    out = jax.block_until_ready(out)

    ref = ref_forward(x, w_pam, b_pam, w_cam, b_cam)
    assert out.shape == (B, C, H, W)
    assert jnp.allclose(out, ref, atol=1e-4, rtol=1e-4), "mismatch vs reference"

    print("KERNEL_OK")
</pallas_src>

<mosaic_0001>
module attributes {stable_mosaic.version = 11 : i64} {
  func.func @_dual_attention_kernel(%arg0: memref<3x4x128xf32, #tpu.memory_space<vmem>>, %arg1: memref<2xf32, #tpu.memory_space<smem>>, %arg2: memref<2x4x128xf32, #tpu.memory_space<vmem>>) attributes {dimension_semantics = [], scalar_prefetch = 0 : i64, scratch_operands = 0 : i64, tpu.core_type = #tpu.core_type<tc>} {
    %c0 = arith.constant 0 : index
    %c0_0 = arith.constant 0 : index
    %c0_1 = arith.constant 0 : index
    %0 = vector.load %arg0[%c0, %c0_0, %c0_1] : memref<3x4x128xf32, #tpu.memory_space<vmem>>, vector<2x4x128xf32>
    %c2 = arith.constant 2 : index
    %c0_2 = arith.constant 0 : index
    %c0_3 = arith.constant 0 : index
    %1 = vector.load %arg0[%c2, %c0_2, %c0_3] : memref<3x4x128xf32, #tpu.memory_space<vmem>>, vector<1x1x128xf32>
    %2 = vector.shape_cast %1 : vector<1x1x128xf32> to vector<1x128xf32>
    %c2_4 = arith.constant 2 : index
    %c1 = arith.constant 1 : index
    %c0_5 = arith.constant 0 : index
    %3 = vector.load %arg0[%c2_4, %c1, %c0_5] : memref<3x4x128xf32, #tpu.memory_space<vmem>>, vector<1x1x128xf32>
    %4 = vector.shape_cast %3 : vector<1x1x128xf32> to vector<1x128xf32>
    %5 = vector.shape_cast %2 : vector<1x128xf32> to vector<1x1x128xf32>
    %6 = vector.broadcast %5 : vector<1x1x128xf32> to vector<2x4x128xf32>
    %7 = arith.mulf %0, %6 : vector<2x4x128xf32>
    %8 = vector.shape_cast %4 : vector<1x128xf32> to vector<1x1x128xf32>
    %9 = vector.broadcast %8 : vector<1x1x128xf32> to vector<2x4x128xf32>
    %10 = arith.mulf %0, %9 : vector<2x4x128xf32>
    %11 = tpu.concatenate %7, %10 in 0 : vector<2x4x128xf32>, vector<2x4x128xf32> -> vector<4x4x128xf32>
    %cst = arith.constant dense<0.000000e+00> : vector<4x4xf32>
    %12 = vector.multi_reduction <add>, %11, %cst [2] : vector<4x4x128xf32> to vector<4x4xf32>
    %13 = vector.shape_cast %12 : vector<4x4xf32> to vector<4x4x1xf32>
    %14 = vector.extract_strided_slice %13 {offsets = [0, 0, 0], sizes = [2, 4, 1], strides = [1, 1, 1]} : vector<4x4x1xf32> to vector<2x4x1xf32>
    %cst_6 = arith.constant dense<0xFF800000> : vector<2x1xf32>
    %15 = vector.multi_reduction <maximumf>, %14, %cst_6 [1] : vector<2x4x1xf32> to vector<2x1xf32>
    %16 = vector.shape_cast %15 : vector<2x1xf32> to vector<2x1x1xf32>
    %c0_7 = arith.constant 0 : index
    %17 = memref.load %arg1[%c0_7] : memref<2xf32, #tpu.memory_space<smem>>
    %18 = vector.broadcast %17 : f32 to vector<2x1x1xf32>
    %19 = arith.addf %16, %18 : vector<2x1x1xf32>
    %20 = arith.negf %19 : vector<2x1x1xf32>
    %21 = math.exp %20 : vector<2x1x1xf32>
    %cst_8 = arith.constant 1.000000e+00 : f32
    %22 = vector.broadcast %cst_8 : f32 to vector<2x1x1xf32>
    %23 = arith.addf %22, %21 : vector<2x1x1xf32>
    %24 = arith.divf %22, %23 : vector<2x1x1xf32>
    %25 = vector.extract_strided_slice %13 {offsets = [2, 0, 0], sizes = [2, 4, 1], strides = [1, 1, 1]} : vector<4x4x1xf32> to vector<2x4x1xf32>
    %cst_9 = arith.constant dense<0.000000e+00> : vector<2x1xf32>
    %26 = vector.multi_reduction <add>, %25, %cst_9 [1] : vector<2x4x1xf32> to vector<2x1xf32>
    %27 = vector.shape_cast %26 : vector<2x1xf32> to vector<2x1x1xf32>
    %cst_10 = arith.constant 4.000000e+00 : f32
    %28 = vector.broadcast %cst_10 : f32 to vector<2x1x1xf32>
    %29 = arith.divf %27, %28 : vector<2x1x1xf32>
    %c1_11 = arith.constant 1 : index
    %30 = memref.load %arg1[%c1_11] : memref<2xf32, #tpu.memory_space<smem>>
    %31 = vector.broadcast %30 : f32 to vector<2x1x1xf32>
    %32 = arith.addf %29, %31 : vector<2x1x1xf32>
    %33 = arith.negf %32 : vector<2x1x1xf32>
    %34 = math.exp %33 : vector<2x1x1xf32>
    %cst_12 = arith.constant 1.000000e+00 : f32
    %35 = vector.broadcast %cst_12 : f32 to vector<2x1x1xf32>
    %36 = arith.addf %35, %34 : vector<2x1x1xf32>
    %37 = arith.divf %35, %36 : vector<2x1x1xf32>
    %38 = arith.mulf %24, %37 : vector<2x1x1xf32>
    %39 = vector.broadcast %38 : vector<2x1x1xf32> to vector<2x4x128xf32>
    %40 = arith.mulf %0, %39 : vector<2x4x128xf32>
    %c0_13 = arith.constant 0 : index
    %c0_14 = arith.constant 0 : index
    %c0_15 = arith.constant 0 : index
    %41 = vector.load %arg2[%c0_13, %c0_14, %c0_15] : memref<2x4x128xf32, #tpu.memory_space<vmem>>, vector<2x4x128xf32>
    tpu.vector_store %arg2[%c0_13, %c0_14, %c0_15], %40 {strides = array<i32>} : memref<2x4x128xf32, #tpu.memory_space<vmem>>, vector<2x4x128xf32>,
    return
  }
}

</mosaic_0001>

<bundles_post_ra>
// kernel: dual_attention.2
= control target key start
LH: loop header
LB: loop body
LE: loop exit
PB: predicated region body
PF: predicated region fallthrough
CT: control target
= control target key end

     0   :  { %s370_s0 = inlined_call_operand.vmem [shape: f32[2], index: 0, kind: input, shape index: {}]   ;;  %s371_s1 = inlined_call_operand.vmem [shape: f32[1,4,128], index: 1, kind: input, shape index: {}]   ;;  %s372_s2 = inlined_call_operand.<no memory space> [shape: f32[], index: 2, kind: input, shape index: {}]   ;;  %s373_s3 = inlined_call_operand.vmem [shape: f32[2,4,128], index: 3, kind: input, shape index: {}]   ;;  %s374_s4 = inlined_call_operand.hbm [shape: f32[2,4,128], index: 4, kind: output, shape index: {}]  }
   0x1   :  { %v9_v0 = vstv %s372_s2 }
   0x2   :  { %11 = vsyncpa [#allocation14], 0 }
   0x3   :  { %12 = vsyncpa [#allocation13], 0  ;;  %s33_s19 = sshll.u32 %s370_s0, 4  ;;  %s34_s19 = int_to_ptr.vmem [resolvable:$true] %s33_s19 }
   0x4   :  { %s252_s20 = scalar_lea.vmem %s34_s19, 16  ;;  %p257_p1 = scmp.lt.s32.totalorder %s34_s19, %s34_s19 }
   0x5   :  { %p253_p0 = scmp.ne.s32.totalorder %s34_s19, %s252_s20  ;;  %p258_p2 = scmp.lt.s32.totalorder %s252_s20, %s252_s20 }
   0x7   :  { %p259_p3 = por %p258_p2, %p257_p1 }
   0x9   :  { %p260_p4 = pnand %p259_p3, %p253_p0 }
   0xb   :  { %263 = shalt.err (!%p260_p4)
}
   0xc   :  { %s290_s21 = smov [#allocation12]  }
   0xd   :  { %36 = dma.vmem_to_smem %s34_s19, 16, %s290_s21, [#allocation14]  }
   0xe   :  { %286 = dma.done.wait [#allocation14], 16  }
   0xf   :  { %287 = vsyncadd [#allocation14], 4294967280 }
  0x10   :  { %40 = sfence }
  0x11   :  { %v65_v1 = vlaneseq  ;;  %v63_v2 = vld [vmem:[%s371_s1] sm:$0xf]  ;;  %v224_v5 = vld [vmem:[%s373_s3 + $0x4] sm:$0xf]  ;;  %vm119_vm1 = vcmask 1043456   ;;  %s348_s1 = sld [smem:[#allocation12]] }
  0x12   :  { %v64_v3 = vld [vmem:[%s373_s3] sm:$0xf]  ;;  %s350_s3 = sld [smem:[#allocation12 + $0x1]]  ;;  %s291_s26 = smov [#allocation15]  }
  0x13   :  { %v66_v4 = vshrl.u32 %v65_v1, 7  ;;  %s206_s27 = sshll.u32 %s291_s26, 4  ;;  %s207_s27 = int_to_ptr.vmem [resolvable:$true] %s206_s27 }
  0x14   :  { %s264_s28 = scalar_lea.vmem %s207_s27, 128  ;;  %p269_p6 = scmp.lt.s32.totalorder %s207_s27, %s207_s27 }
  0x15   :  { %vm68_vm0 = vcmp.lt.s32.totalorder %v66_v4, 4  ;;  %p265_p5 = scmp.ne.s32.totalorder %s207_s27, %s264_s28  ;;  %p270_p7 = scmp.lt.s32.totalorder %s264_s28, %s264_s28 }
  0x16   :  { %v69_v6 = vsel %vm68_vm0, %v64_v3, %v9_v0  ;;  %v94_v7 = vsel %vm68_vm0, %v63_v2, %v9_v0  ;;  %v82_v8 = vsel %vm68_vm0, %v224_v5, %v9_v0 }
  0x17   :  { %v72_v9 = vmax.f32 %v69_v6, %v9_v0  ;;  %v97_v10 = vmax.f32 %v9_v0, %v94_v7  ;;  %v85_v11 = vmax.f32 %v82_v8, %v9_v0  ;;  %v147_v48 = vstv %s348_s1  ;;  %p271_p8 = por %p270_p7, %p269_p6 }
  0x18   :  { %v180_v53 = vstv %s350_s3 }
  0x19   :  { %75 = vst [vmem:[#allocation16] sm:$0xf] %v72_v9  ;;  %101 = vst [vmem:[#allocation16 + $0x8] sm:$0xf] %v97_v10  ;;  %p272_p9 = pnand %p271_p8, %p265_p5 }
  0x1a   :  { %89 = vst [vmem:[#allocation16 + $0x4] sm:$0xf] %v85_v11 }
  0x20   :  { %v334_v12 = vld [vmem:[#allocation16] sm:$0xf]  ;;  %v226_v13 = vld [vmem:[#allocation16 + $0x9] ss:$0 sm:$0xff]  ;;  %v225_v14 = vld [vmem:[#allocation16 + $0x8] ss:$0 sm:$0xff] }
  0x21   :  { %v117_v15 = vmul.f32 %v226_v13, %v334_v12  ;;  %v111_v16 = vmul.f32 %v225_v14, %v334_v12  ;;  %v338_v17 = vld [vmem:[#allocation16 + $0x4] sm:$0xf] }
  0x22   :  { %v118_v18 = vmul.f32 %v226_v13, %v338_v17  ;;  %v112_v19 = vmul.f32 %v225_v14, %v338_v17 }
  0x23   :  { %v126_v20 = vsel %vm119_vm1, %v117_v15, 0.0  ;;  %v120_v21 = vsel %vm119_vm1, %v111_v16, 0.0 }
  0x24   :  { %127 = vadd.xlane.f32.xlu0 %v126_v20  ;;  %121 = vadd.xlane.f32.xlu1 %v120_v21  ;;  %v129_v22 = vsel %vm119_vm1, %v118_v18, 0.0  ;;  %v123_v23 = vsel %vm119_vm1, %v112_v19, 0.0 }
  0x28   :  { %130 = vadd.xlane.f32.xlu0 %v129_v22  ;;  %124 = vadd.xlane.f32.xlu1 %v123_v23 }
  0xb1   :  { %v128_v24 = vpop.xlane.xlu0 %127  ;;  %v122_v25 = vpop.xlane.xlu1 %121 }
  0xb2   :  { %v162_v26 = vsel %vm119_vm1, %v128_v24, 0.0  ;;  %v132_v27 = vsel %vm119_vm1, %v122_v25, -inf }
  0xb3   :  { %v163_v28 = vrot.slane %v162_v26, 4  ;;  %v133_v29 = vrot.slane %v132_v27, 4 }
  0xb5   :  { %v164_v30 = vadd.f32 %v163_v28, %v162_v26  ;;  %v134_v31 = vmax.f32 %v132_v27, %v133_v29  ;;  %v131_v32 = vpop.xlane.xlu0 %130  ;;  %v125_v33 = vpop.xlane.xlu1 %124 }
  0xb6   :  { %v169_v34 = vsel %vm119_vm1, %v131_v32, 0.0  ;;  %v139_v35 = vsel %vm119_vm1, %v125_v33, -inf }
  0xb7   :  { %v165_v36 = vrot.slane %v164_v30, 2  ;;  %v135_v37 = vrot.slane %v134_v31, 2  ;;  %v170_v38 = vrot.slane %v169_v34, 4  ;;  %v140_v39 = vrot.slane %v139_v35, 4 }
  0xb9   :  { %v166_v40 = vadd.f32 %v165_v36, %v164_v30  ;;  %v136_v41 = vmax.f32 %v134_v31, %v135_v37  ;;  %v171_v42 = vadd.f32 %v170_v38, %v169_v34  ;;  %v141_v43 = vmax.f32 %v139_v35, %v140_v39 }
  0xbb   :  { %v167_v44 = vrot.slane %v166_v40, 1  ;;  %v137_v45 = vrot.slane %v136_v41, 1  ;;  %v172_v46 = vrot.slane %v171_v42, 2  ;;  %v142_v47 = vrot.slane %v141_v43, 2 }
  0xbd   :  { %v168_v49 = vadd.f32 %v167_v44, %v166_v40  ;;  %v138_v50 = vmax.f32 %v136_v41, %v137_v45  ;;  %v173_v51 = vadd.f32 %v172_v46, %v171_v42  ;;  %v143_v52 = vmax.f32 %v141_v43, %v142_v47 }
  0xbf   :  { %v177_v54 = vmul.f32 0.25, %v168_v49  ;;  %v148_v55 = vadd.f32 %v147_v48, %v138_v50  ;;  %v174_v56 = vrot.slane %v173_v51, 1  ;;  %v144_v57 = vrot.slane %v143_v52, 1 }
  0xc1   :  { %v181_v58 = vadd.f32 %v180_v53, %v177_v54  ;;  %v227_v59 = vmul.f32 -1.442695, %v148_v55  ;;  %v175_v60 = vadd.f32 %v174_v56, %v173_v51  ;;  %v145_v61 = vmax.f32 %v143_v52, %v144_v57 }
  0xc3   :  { %v230_v62 = vmul.f32 -1.442695, %v181_v58  ;;  %236 = vpow2.f32 %v227_v59  ;;  %v178_v63 = vmul.f32 0.25, %v175_v60  ;;  %v149_v0 = vadd.f32 %v147_v48, %v145_v61 }
  0xc5   :  { %238 = vpow2.f32 %v230_v62  ;;  %v182_v1 = vadd.f32 %v180_v53, %v178_v63  ;;  %v228_v2 = vmul.f32 -1.442695, %v149_v0 }
  0xc7   :  { %v231_v3 = vmul.f32 -1.442695, %v182_v1  ;;  %240 = vpow2.f32 %v228_v2 }
  0xc9   :  { %242 = vpow2.f32 %v231_v3 }
  0xcd   :  { %v237_v4 = vpop.eup %236 }
  0xce   :  { %v156_v5 = vadd.f32 1.0, %v237_v4 }
  0xcf   :  { %v239_v6 = vpop.eup %238 }
  0xd0   :  { %v189_v7 = vadd.f32 1.0, %v239_v6  ;;  %244 = vrcp.f32 %v156_v5 }
  0xd1   :  { %v241_v8 = vpop.eup %240 }
  0xd2   :  { %246 = vrcp.f32 %v189_v7  ;;  %v157_v9 = vadd.f32 1.0, %v241_v8 }
  0xd3   :  { %v243_v10 = vpop.eup %242 }
  0xd4   :  { %v190_v11 = vadd.f32 1.0, %v243_v10  ;;  %248 = vrcp.f32 %v157_v9 }
  0xd6   :  { %250 = vrcp.f32 %v190_v11 }
  0xda   :  { %v245_v13 = vpop.eup %244 }
  0xdc   :  { %v247_v14 = vpop.eup %246 }
  0xdd   :  { %v195_v15 = vmul.f32 %v247_v14, %v245_v13 }
  0xde   :  { %v249_v16 = vpop.eup %248 }
  0xdf   :  { %v197_v18 = vmul.f32 %v195_v15, %v334_v12 }
  0xe0   :  { %v251_v19 = vpop.eup %250 }
  0xe1   :  { %v196_v20 = vmul.f32 %v251_v19, %v249_v16  ;;  %199 = vst [vmem:[#allocation15] sm:$0xf] %v197_v18 }
  0xe3   :  { %v198_v21 = vmul.f32 %v196_v20, %v338_v17 }
  0xe5   :  { %200 = vst [vmem:[#allocation15 + $0x4] sm:$0xf] %v198_v21 }
  0xe6   :  { %275 = shalt.err (!%p272_p9)
}
  0xe7   :  { %s276_s5 = scalar_lea.hbm %s374_s4, 128 }
  0xe8   :  { %p277_p10 = scmp.ne.s32.totalorder %s374_s4, %s276_s5  ;;  %p280_p11 = scmp.lt.u32.totalorder %s276_s5, %s374_s4 }
  0xea   :  { %p282_p12 = pnand %p280_p11, %p277_p10 }
  0xec   :  { %285 = shalt.err (!%p282_p12)
}
  0xed   :  { %s292_s10 = smov 64   ;;  %s293_s11 = smov 4  }
  0xee   :  { %212 = dma.vmem_to_hbm [thread:$0]  %s207_s27, 128, %s374_s4, [#allocation13], %s292_s10, %s292_s10, %s293_s11  }
  0xef   :  { %288 = dma.done.wait [#allocation13], 128  }
  0xf0   :  { %289 = vsyncadd [#allocation13], 4294967168 }
  0xf1   :  { %216 = vsyncpa [#allocation13], 1 }
  0xf2   :  { %217 = vsyncpa [#allocation14], 1 }

</bundles_post_ra>
